<compile_context>
chip_gen: v7x
topology: tpu7x:2x2x1
jax: 0.10.0
libtpu: 0.0.40
codegen_flags: <defaults>
</compile_context>

<pallas_src>
import functools

import jax
import jax.numpy as jnp
from jax.experimental import pallas as pl
from jax.experimental.pallas import tpu as pltpu


# ---------------------------------------------------------------------------
# Fused Pallas kernel
# ---------------------------------------------------------------------------
def _fused_attention_kernel(x_ref, wtap_ref, bc_ref, lwt_ref, lb_ref,
                            o_ref, flat_ref, *, width):
    C, N = x_ref.shape              # (filters_in, H*W)
    F = wtap_ref.shape[1]           # filters_out
    W = width
    H = N // W

    x = x_ref[...]                  # (C, N) original activations (used twice)

    lane = jax.lax.broadcasted_iota(jnp.int32, (F, N), 1)
    wpos = lane & (W - 1)           # W is a power of two
    even_w = (lane & 1) == 0        # pair partner along W is lane ^ 1
    even_h = (lane & W) == 0        # pair partner along H is lane ^ W

    # ---- Conv3d == 3x3 conv over C channels: 9 taps, each a tiny MXU matmul whose
    #      (F, N) result is rolled by the tap's flat offset and boundary-masked.
    conv = jnp.zeros((F, N), jnp.float32)
    for di in range(3):
        for dj in range(3):
            y = jnp.dot(wtap_ref[3 * di + dj], x,
                        preferred_element_type=jnp.float32)          # (F, N)
            off = (di - 1) * W + (dj - 1)
            if off != 0:
                y = pltpu.roll(y, (-off) % N, axis=1)                # y[:, n] <- y[:, n+off]
            conds = []
            if di == 0:
                conds.append(lane >= W)                 # needs h-1 >= 0
            if di == 2:
                conds.append(lane < (H - 1) * W)        # needs h+1 <= H-1
            if dj == 0:
                conds.append(wpos >= 1)                 # needs w-1 >= 0
            if dj == 2:
                conds.append(wpos <= W - 2)             # needs w+1 <= W-1
            if conds:
                y = jnp.where(functools.reduce(jnp.logical_and, conds), y, 0.0)
            conv = conv + y
    conv = conv + bc_ref[...]                            # (F, N) + (F, 1)

    # ---- MinMaxLayer: 2x2 max/min pool + 2x nearest upsample in flat layout.
    def _pair(v, mask_even, step):
        fwd = pltpu.roll(v, N - step, axis=1)            # fwd[:, i] = v[:, i + step]
        bwd = pltpu.roll(v, step, axis=1)                # bwd[:, i] = v[:, i - step]
        return jnp.where(mask_even, fwd, bwd)            # partner at lane i ^ step

    def _pool_up(v, op):
        a = op(v, _pair(v, even_w, 1))                   # pairwise along W
        return op(a, _pair(a, even_h, W))                # then pairwise along H

    x_max = _pool_up(conv, jnp.maximum)
    x_min = _pool_up(conv, jnp.minimum)

    # ---- spatial softmax per filter (normalization deferred: softmax = e * inv_sum)
    def _softmax_unnorm(v):
        m = jnp.max(v, axis=-1, keepdims=True)
        e = jnp.exp(v - m)
        inv = pl.reciprocal(jnp.sum(e, axis=-1, keepdims=True), approx=True)
        return e, inv

    e_max, inv_max = _softmax_unnorm(x_max)
    e_min, inv_min = _softmax_unnorm(x_min)

    # ---- feature extraction: attn (F,N) contracted with x (C,N) over the lane axis N,
    #      then the deferred softmax normalization and ReLU.
    dn = (((1,), (1,)), ((), ()))
    v1 = jnp.maximum(
        jax.lax.dot_general(e_max, x, dn, preferred_element_type=jnp.float32) * inv_max,
        0.0)                                             # (F, C)
    v2 = jnp.maximum(
        jax.lax.dot_general(e_min, x, dn, preferred_element_type=jnp.float32) * inv_min,
        0.0)                                             # (F, C)

    # ---- flatten [vec(v1); vec(v2)] row-major into a (1, 2FC) scratch row
    #      (matches torch's reshape(F*C) + cat), then the fused Linear -> (1, K).
    for f in range(F):
        flat_ref[:, f * C:(f + 1) * C] = v1[f:f + 1, :]
        flat_ref[:, F * C + f * C:F * C + (f + 1) * C] = v2[f:f + 1, :]
    o_ref[...] = jnp.dot(flat_ref[...], lwt_ref[...],
                         preferred_element_type=jnp.float32) + lb_ref[...]


# ---------------------------------------------------------------------------
# Wrapper (only reshapes / parameter repacking in plain JAX)
# ---------------------------------------------------------------------------
def attention_model_forward(x, params):
    """AttentionModel forward (eval mode). x: (1, filters_in, H, W) f32 -> (1, K)."""
    assert x.ndim == 4 and x.shape[0] == 1, "Conv3d(in_channels=1) forces batch == 1"
    _, C, H, W = x.shape
    assert H % 2 == 0 and W % 2 == 0 and (W & (W - 1)) == 0, \
        "flat-layout pooling needs even H and power-of-two W"
    N = H * W

    conv_w = params["conv_w"]      # (F, 1, C, 3, 3)  torch Conv3d weight
    conv_b = params["conv_b"]      # (F,)
    lin_wt = params["lin_wt"]      # (2*F*C, K)       torch Linear weight, pre-transposed
    lin_b = params["lin_b"]        # (K,)
    Fo = conv_w.shape[0]
    K = lin_wt.shape[1]

    x_flat = x[0].reshape(C, N)                                        # (C, N)
    # per-tap (F, C) weight matrices; tap index = 3*di + dj
    w_taps = jnp.transpose(conv_w[:, 0], (2, 3, 0, 1)).reshape(9, Fo, C)
    bc = conv_b.reshape(Fo, 1)
    lb = lin_b.reshape(1, K)

    vmem = pl.BlockSpec(memory_space=pltpu.MemorySpace.VMEM)
    out = pl.pallas_call(
        functools.partial(_fused_attention_kernel, width=W),
        out_shape=jax.ShapeDtypeStruct((1, K), jnp.float32),
        in_specs=[vmem] * 5,
        out_specs=vmem,
        scratch_shapes=[pltpu.VMEM((1, 2 * Fo * C), jnp.float32)],
    )(x_flat, w_taps, bc, lin_wt, lb)
    # TODO(synk): nn.Dropout is identity at inference; omitted (no RNG drop applied).
    return out                                                          # (1, num_classes)


# ---------------------------------------------------------------------------
# Pure-JAX reference of the torch forward (for numerical verification)
# ---------------------------------------------------------------------------
def _reference_forward(x, params):
    _, C, H, W = x.shape
    N = H * W
    wc = params["conv_w"][:, 0]          # (F, C, 3, 3)
    bc = params["conv_b"]
    lwt = params["lin_wt"]
    lb = params["lin_b"]
    Fo = wc.shape[0]

    xc = x[0]
    xp = jnp.pad(xc, ((0, 0), (1, 1), (1, 1)))
    cols = jnp.stack([jnp.stack([xp[:, di:di + H, dj:dj + W] for dj in range(3)], 0)
                      for di in range(3)], 0)                           # (3,3,C,H,W)
    conv = jnp.einsum("fcij,ijchw->fhw", wc, cols,
                      precision="highest") + bc[:, None, None]

    def pool_up(v, op):
        r = v.reshape(Fo, H // 2, 2, W // 2, 2)
        p = op(op(r, axis=4), axis=2)                                   # (F, H/2, W/2)
        return jnp.repeat(jnp.repeat(p, 2, axis=1), 2, axis=2)

    a_max = jax.nn.softmax(pool_up(conv, jnp.max).reshape(Fo, N), axis=1)
    a_min = jax.nn.softmax(pool_up(conv, jnp.min).reshape(Fo, N), axis=1)

    xf = xc.reshape(C, N)
    v1 = jnp.maximum(jnp.einsum("fn,cn->fc", a_max, xf, precision="highest"), 0.0)
    v2 = jnp.maximum(jnp.einsum("fn,cn->fc", a_min, xf, precision="highest"), 0.0)
    x4 = jnp.concatenate([v1.reshape(-1), v2.reshape(-1)])[None, :]
    return jnp.dot(x4, lwt, precision="highest") + lb[None, :]


# ---------------------------------------------------------------------------
# Deterministic parameter init (shapes from the module's __init__)
# ---------------------------------------------------------------------------
def init_params(key, num_classes, filters_in, filters_out):
    k1, k2, k3, k4 = jax.random.split(key, 4)
    lin_w = 0.1 * jax.random.normal(
        k3, (num_classes, filters_in * filters_out * 2), jnp.float32)  # torch (K, 2FC)
    return dict(
        conv_w=0.1 * jax.random.normal(k1, (filters_out, 1, filters_in, 3, 3),
                                       jnp.float32),
        conv_b=0.1 * jax.random.normal(k2, (filters_out,), jnp.float32),
        lin_wt=jnp.transpose(lin_w),     # pre-transposed once at setup, not per forward
        lin_b=0.1 * jax.random.normal(k4, (num_classes,), jnp.float32),
    )


if __name__ == "__main__":
    num_classes, filters_in, filters_out = 10, 4, 8
    H = W = 16

    key = jax.random.PRNGKey(0)
    kx, kp = jax.random.split(key)
    x = jax.random.normal(kx, (1, filters_in, H, W), jnp.float32)
    params = init_params(kp, num_classes, filters_in, filters_out)

    fwd = jax.jit(attention_model_forward)
    out = jax.block_until_ready(fwd(x, params))
    assert out.shape == (1, num_classes) and out.dtype == jnp.float32

    # numerical check against the pure-JAX reference (loose tol: approx reciprocal)
    ref = jax.block_until_ready(_reference_forward(x, params))
    assert jnp.allclose(out, ref, rtol=5e-2, atol=5e-3), (out, ref)

    # TODO(synk): MinMaxLayer source not provided; implemented as 2x2 max/min pool +
    # 2x nearest upsample, the only semantics consistent with Linear in_features.
    print("KERNEL_OK")
</pallas_src>

<mosaic_0001>
module attributes {stable_mosaic.version = 11 : i64} {
  func.func @_fused_attention_kernel(%arg0: memref<4x256xf32, #tpu.memory_space<vmem>>, %arg1: memref<9x8x4xf32, #tpu.memory_space<vmem>>, %arg2: memref<8x1xf32, #tpu.memory_space<vmem>>, %arg3: memref<64x10xf32, #tpu.memory_space<vmem>>, %arg4: memref<1x10xf32, #tpu.memory_space<vmem>>, %arg5: memref<1x10xf32, #tpu.memory_space<vmem>>, %arg6: memref<1x64xf32, #tpu.memory_space<vmem>>) attributes {dimension_semantics = [], scalar_prefetch = 0 : i64, scratch_operands = 1 : i64, tpu.core_type = #tpu.core_type<tc>} {
    %c0 = arith.constant 0 : index
    %c0_0 = arith.constant 0 : index
    %0 = vector.load %arg0[%c0, %c0_0] : memref<4x256xf32, #tpu.memory_space<vmem>>, vector<4x256xf32>
    %1 = tpu.iota {dimensions = array<i32: 1>} : vector<8x256xi32>
    %c15_i32 = arith.constant 15 : i32
    %2 = vector.broadcast %c15_i32 : i32 to vector<8x256xi32>
    %3 = arith.andi %1, %2 : vector<8x256xi32>
    %c1_i32 = arith.constant 1 : i32
    %4 = vector.broadcast %c1_i32 : i32 to vector<8x256xi32>
    %5 = arith.andi %1, %4 : vector<8x256xi32>
    %c0_i32 = arith.constant 0 : i32
    %6 = vector.broadcast %c0_i32 : i32 to vector<8x256xi32>
    %7 = arith.cmpi eq, %5, %6 : vector<8x256xi32>
    %c16_i32 = arith.constant 16 : i32
    %8 = vector.broadcast %c16_i32 : i32 to vector<8x256xi32>
    %9 = arith.andi %1, %8 : vector<8x256xi32>
    %c0_i32_1 = arith.constant 0 : i32
    %10 = vector.broadcast %c0_i32_1 : i32 to vector<8x256xi32>
    %11 = arith.cmpi eq, %9, %10 : vector<8x256xi32>
    %cst = arith.constant 0.000000e+00 : f32
    %12 = vector.broadcast %cst : f32 to vector<8x256xf32>
    %c0_2 = arith.constant 0 : index
    %c0_3 = arith.constant 0 : index
    %c0_4 = arith.constant 0 : index
    %13 = vector.load %arg1[%c0_2, %c0_3, %c0_4] : memref<9x8x4xf32, #tpu.memory_space<vmem>>, vector<1x8x4xf32>
    %14 = vector.shape_cast %13 : vector<1x8x4xf32> to vector<8x4xf32>
    %cst_5 = arith.constant dense<0.000000e+00> : vector<8x256xf32>
    %15 = tpu.matmul %14, %0, %cst_5 {dimension_numbers = #tpu.dot_dimension_numbers<[1], [0], [0], [1], [0, 0, 1, 1], [], []>} : vector<8x4xf32>, vector<4x256xf32>, vector<8x256xf32> -> vector<8x256xf32>
    %c17_i32 = arith.constant 17 : i32
    %16 = tpu.dynamic_rotate %15 by %c17_i32 dim 1 : vector<8x256xf32>, i32 -> vector<8x256xf32>
    %c16_i32_6 = arith.constant 16 : i32
    %17 = vector.broadcast %c16_i32_6 : i32 to vector<8x256xi32>
    %18 = arith.cmpi sge, %1, %17 : vector<8x256xi32>
    %c1_i32_7 = arith.constant 1 : i32
    %19 = vector.broadcast %c1_i32_7 : i32 to vector<8x256xi32>
    %20 = arith.cmpi sge, %3, %19 : vector<8x256xi32>
    %21 = arith.andi %18, %20 : vector<8x256xi1>
    %cst_8 = arith.constant 0.000000e+00 : f32
    %22 = vector.broadcast %cst_8 : f32 to vector<8x256xf32>
    %23 = arith.select %21, %16, %22 : vector<8x256xi1>, vector<8x256xf32>
    %24 = arith.addf %12, %23 : vector<8x256xf32>
    %c1 = arith.constant 1 : index
    %c0_9 = arith.constant 0 : index
    %c0_10 = arith.constant 0 : index
    %25 = vector.load %arg1[%c1, %c0_9, %c0_10] : memref<9x8x4xf32, #tpu.memory_space<vmem>>, vector<1x8x4xf32>
    %26 = vector.shape_cast %25 : vector<1x8x4xf32> to vector<8x4xf32>
    %cst_11 = arith.constant dense<0.000000e+00> : vector<8x256xf32>
    %27 = tpu.matmul %26, %0, %cst_11 {dimension_numbers = #tpu.dot_dimension_numbers<[1], [0], [0], [1], [0, 0, 1, 1], [], []>} : vector<8x4xf32>, vector<4x256xf32>, vector<8x256xf32> -> vector<8x256xf32>
    %c16_i32_12 = arith.constant 16 : i32
    %28 = tpu.dynamic_rotate %27 by %c16_i32_12 dim 1 : vector<8x256xf32>, i32 -> vector<8x256xf32>
    %c16_i32_13 = arith.constant 16 : i32
    %29 = vector.broadcast %c16_i32_13 : i32 to vector<8x256xi32>
    %30 = arith.cmpi sge, %1, %29 : vector<8x256xi32>
    %cst_14 = arith.constant 0.000000e+00 : f32
    %31 = vector.broadcast %cst_14 : f32 to vector<8x256xf32>
    %32 = arith.select %30, %28, %31 : vector<8x256xi1>, vector<8x256xf32>
    %33 = arith.addf %24, %32 : vector<8x256xf32>
    %c2 = arith.constant 2 : index
    %c0_15 = arith.constant 0 : index
    %c0_16 = arith.constant 0 : index
    %34 = vector.load %arg1[%c2, %c0_15, %c0_16] : memref<9x8x4xf32, #tpu.memory_space<vmem>>, vector<1x8x4xf32>
    %35 = vector.shape_cast %34 : vector<1x8x4xf32> to vector<8x4xf32>
    %cst_17 = arith.constant dense<0.000000e+00> : vector<8x256xf32>
    %36 = tpu.matmul %35, %0, %cst_17 {dimension_numbers = #tpu.dot_dimension_numbers<[1], [0], [0], [1], [0, 0, 1, 1], [], []>} : vector<8x4xf32>, vector<4x256xf32>, vector<8x256xf32> -> vector<8x256xf32>
    %c15_i32_18 = arith.constant 15 : i32
    %37 = tpu.dynamic_rotate %36 by %c15_i32_18 dim 1 : vector<8x256xf32>, i32 -> vector<8x256xf32>
    %c16_i32_19 = arith.constant 16 : i32
    %38 = vector.broadcast %c16_i32_19 : i32 to vector<8x256xi32>
    %39 = arith.cmpi sge, %1, %38 : vector<8x256xi32>
    %c14_i32 = arith.constant 14 : i32
    %40 = vector.broadcast %c14_i32 : i32 to vector<8x256xi32>
    %41 = arith.cmpi sle, %3, %40 : vector<8x256xi32>
    %42 = arith.andi %39, %41 : vector<8x256xi1>
    %cst_20 = arith.constant 0.000000e+00 : f32
    %43 = vector.broadcast %cst_20 : f32 to vector<8x256xf32>
    %44 = arith.select %42, %37, %43 : vector<8x256xi1>, vector<8x256xf32>
    %45 = arith.addf %33, %44 : vector<8x256xf32>
    %c3 = arith.constant 3 : index
    %c0_21 = arith.constant 0 : index
    %c0_22 = arith.constant 0 : index
    %46 = vector.load %arg1[%c3, %c0_21, %c0_22] : memref<9x8x4xf32, #tpu.memory_space<vmem>>, vector<1x8x4xf32>
    %47 = vector.shape_cast %46 : vector<1x8x4xf32> to vector<8x4xf32>
    %cst_23 = arith.constant dense<0.000000e+00> : vector<8x256xf32>
    %48 = tpu.matmul %47, %0, %cst_23 {dimension_numbers = #tpu.dot_dimension_numbers<[1], [0], [0], [1], [0, 0, 1, 1], [], []>} : vector<8x4xf32>, vector<4x256xf32>, vector<8x256xf32> -> vector<8x256xf32>
    %c1_i32_24 = arith.constant 1 : i32
    %49 = tpu.dynamic_rotate %48 by %c1_i32_24 dim 1 : vector<8x256xf32>, i32 -> vector<8x256xf32>
    %c1_i32_25 = arith.constant 1 : i32
    %50 = vector.broadcast %c1_i32_25 : i32 to vector<8x256xi32>
    %51 = arith.cmpi sge, %3, %50 : vector<8x256xi32>
    %cst_26 = arith.constant 0.000000e+00 : f32
    %52 = vector.broadcast %cst_26 : f32 to vector<8x256xf32>
    %53 = arith.select %51, %49, %52 : vector<8x256xi1>, vector<8x256xf32>
    %54 = arith.addf %45, %53 : vector<8x256xf32>
    %c4 = arith.constant 4 : index
    %c0_27 = arith.constant 0 : index
    %c0_28 = arith.constant 0 : index
    %55 = vector.load %arg1[%c4, %c0_27, %c0_28] : memref<9x8x4xf32, #tpu.memory_space<vmem>>, vector<1x8x4xf32>
    %56 = vector.shape_cast %55 : vector<1x8x4xf32> to vector<8x4xf32>
    %cst_29 = arith.constant dense<0.000000e+00> : vector<8x256xf32>
    %57 = tpu.matmul %56, %0, %cst_29 {dimension_numbers = #tpu.dot_dimension_numbers<[1], [0], [0], [1], [0, 0, 1, 1], [], []>} : vector<8x4xf32>, vector<4x256xf32>, vector<8x256xf32> -> vector<8x256xf32>
    %58 = arith.addf %54, %57 : vector<8x256xf32>
    %c5 = arith.constant 5 : index
    %c0_30 = arith.constant 0 : index
    %c0_31 = arith.constant 0 : index
    %59 = vector.load %arg1[%c5, %c0_30, %c0_31] : memref<9x8x4xf32, #tpu.memory_space<vmem>>, vector<1x8x4xf32>
    %60 = vector.shape_cast %59 : vector<1x8x4xf32> to vector<8x4xf32>
    %cst_32 = arith.constant dense<0.000000e+00> : vector<8x256xf32>
    %61 = tpu.matmul %60, %0, %cst_32 {dimension_numbers = #tpu.dot_dimension_numbers<[1], [0], [0], [1], [0, 0, 1, 1], [], []>} : vector<8x4xf32>, vector<4x256xf32>, vector<8x256xf32> -> vector<8x256xf32>
    %c255_i32 = arith.constant 255 : i32
    %62 = tpu.dynamic_rotate %61 by %c255_i32 dim 1 : vector<8x256xf32>, i32 -> vector<8x256xf32>
    %c14_i32_33 = arith.constant 14 : i32
    %63 = vector.broadcast %c14_i32_33 : i32 to vector<8x256xi32>
    %64 = arith.cmpi sle, %3, %63 : vector<8x256xi32>
    %cst_34 = arith.constant 0.000000e+00 : f32
    %65 = vector.broadcast %cst_34 : f32 to vector<8x256xf32>
    %66 = arith.select %64, %62, %65 : vector<8x256xi1>, vector<8x256xf32>
    %67 = arith.addf %58, %66 : vector<8x256xf32>
    %c6 = arith.constant 6 : index
    %c0_35 = arith.constant 0 : index
    %c0_36 = arith.constant 0 : index
    %68 = vector.load %arg1[%c6, %c0_35, %c0_36] : memref<9x8x4xf32, #tpu.memory_space<vmem>>, vector<1x8x4xf32>
    %69 = vector.shape_cast %68 : vector<1x8x4xf32> to vector<8x4xf32>
    %cst_37 = arith.constant dense<0.000000e+00> : vector<8x256xf32>
    %70 = tpu.matmul %69, %0, %cst_37 {dimension_numbers = #tpu.dot_dimension_numbers<[1], [0], [0], [1], [0, 0, 1, 1], [], []>} : vector<8x4xf32>, vector<4x256xf32>, vector<8x256xf32> -> vector<8x256xf32>
    %c241_i32 = arith.constant 241 : i32
    %71 = tpu.dynamic_rotate %70 by %c241_i32 dim 1 : vector<8x256xf32>, i32 -> vector<8x256xf32>
    %c240_i32 = arith.constant 240 : i32
    %72 = vector.broadcast %c240_i32 : i32 to vector<8x256xi32>
    %73 = arith.cmpi slt, %1, %72 : vector<8x256xi32>
    %c1_i32_38 = arith.constant 1 : i32
    %74 = vector.broadcast %c1_i32_38 : i32 to vector<8x256xi32>
    %75 = arith.cmpi sge, %3, %74 : vector<8x256xi32>
    %76 = arith.andi %73, %75 : vector<8x256xi1>
    %cst_39 = arith.constant 0.000000e+00 : f32
    %77 = vector.broadcast %cst_39 : f32 to vector<8x256xf32>
    %78 = arith.select %76, %71, %77 : vector<8x256xi1>, vector<8x256xf32>
    %79 = arith.addf %67, %78 : vector<8x256xf32>
    %c7 = arith.constant 7 : index
    %c0_40 = arith.constant 0 : index
    %c0_41 = arith.constant 0 : index
    %80 = vector.load %arg1[%c7, %c0_40, %c0_41] : memref<9x8x4xf32, #tpu.memory_space<vmem>>, vector<1x8x4xf32>
    %81 = vector.shape_cast %80 : vector<1x8x4xf32> to vector<8x4xf32>
    %cst_42 = arith.constant dense<0.000000e+00> : vector<8x256xf32>
    %82 = tpu.matmul %81, %0, %cst_42 {dimension_numbers = #tpu.dot_dimension_numbers<[1], [0], [0], [1], [0, 0, 1, 1], [], []>} : vector<8x4xf32>, vector<4x256xf32>, vector<8x256xf32> -> vector<8x256xf32>
    %c240_i32_43 = arith.constant 240 : i32
    %83 = tpu.dynamic_rotate %82 by %c240_i32_43 dim 1 : vector<8x256xf32>, i32 -> vector<8x256xf32>
    %c240_i32_44 = arith.constant 240 : i32
    %84 = vector.broadcast %c240_i32_44 : i32 to vector<8x256xi32>
    %85 = arith.cmpi slt, %1, %84 : vector<8x256xi32>
    %cst_45 = arith.constant 0.000000e+00 : f32
    %86 = vector.broadcast %cst_45 : f32 to vector<8x256xf32>
    %87 = arith.select %85, %83, %86 : vector<8x256xi1>, vector<8x256xf32>
    %88 = arith.addf %79, %87 : vector<8x256xf32>
    %c8 = arith.constant 8 : index
    %c0_46 = arith.constant 0 : index
    %c0_47 = arith.constant 0 : index
    %89 = vector.load %arg1[%c8, %c0_46, %c0_47] : memref<9x8x4xf32, #tpu.memory_space<vmem>>, vector<1x8x4xf32>
    %90 = vector.shape_cast %89 : vector<1x8x4xf32> to vector<8x4xf32>
    %cst_48 = arith.constant dense<0.000000e+00> : vector<8x256xf32>
    %91 = tpu.matmul %90, %0, %cst_48 {dimension_numbers = #tpu.dot_dimension_numbers<[1], [0], [0], [1], [0, 0, 1, 1], [], []>} : vector<8x4xf32>, vector<4x256xf32>, vector<8x256xf32> -> vector<8x256xf32>
    %c239_i32 = arith.constant 239 : i32
    %92 = tpu.dynamic_rotate %91 by %c239_i32 dim 1 : vector<8x256xf32>, i32 -> vector<8x256xf32>
    %c240_i32_49 = arith.constant 240 : i32
    %93 = vector.broadcast %c240_i32_49 : i32 to vector<8x256xi32>
    %94 = arith.cmpi slt, %1, %93 : vector<8x256xi32>
    %c14_i32_50 = arith.constant 14 : i32
    %95 = vector.broadcast %c14_i32_50 : i32 to vector<8x256xi32>
    %96 = arith.cmpi sle, %3, %95 : vector<8x256xi32>
    %97 = arith.andi %94, %96 : vector<8x256xi1>
    %cst_51 = arith.constant 0.000000e+00 : f32
    %98 = vector.broadcast %cst_51 : f32 to vector<8x256xf32>
    %99 = arith.select %97, %92, %98 : vector<8x256xi1>, vector<8x256xf32>
    %100 = arith.addf %88, %99 : vector<8x256xf32>
    %c0_52 = arith.constant 0 : index
    %c0_53 = arith.constant 0 : index
    %101 = vector.load %arg2[%c0_52, %c0_53] : memref<8x1xf32, #tpu.memory_space<vmem>>, vector<8x1xf32>
    %102 = vector.broadcast %101 : vector<8x1xf32> to vector<8x256xf32>
    %103 = arith.addf %100, %102 : vector<8x256xf32>
    %c255_i32_54 = arith.constant 255 : i32
    %104 = tpu.dynamic_rotate %103 by %c255_i32_54 dim 1 : vector<8x256xf32>, i32 -> vector<8x256xf32>
    %c1_i32_55 = arith.constant 1 : i32
    %105 = tpu.dynamic_rotate %103 by %c1_i32_55 dim 1 : vector<8x256xf32>, i32 -> vector<8x256xf32>
    %106 = arith.select %7, %104, %105 : vector<8x256xi1>, vector<8x256xf32>
    %107 = arith.maximumf %103, %106 : vector<8x256xf32>
    %c240_i32_56 = arith.constant 240 : i32
    %108 = tpu.dynamic_rotate %107 by %c240_i32_56 dim 1 : vector<8x256xf32>, i32 -> vector<8x256xf32>
    %c16_i32_57 = arith.constant 16 : i32
    %109 = tpu.dynamic_rotate %107 by %c16_i32_57 dim 1 : vector<8x256xf32>, i32 -> vector<8x256xf32>
    %110 = arith.select %11, %108, %109 : vector<8x256xi1>, vector<8x256xf32>
    %111 = arith.maximumf %107, %110 : vector<8x256xf32>
    %c255_i32_58 = arith.constant 255 : i32
    %112 = tpu.dynamic_rotate %103 by %c255_i32_58 dim 1 : vector<8x256xf32>, i32 -> vector<8x256xf32>
    %c1_i32_59 = arith.constant 1 : i32
    %113 = tpu.dynamic_rotate %103 by %c1_i32_59 dim 1 : vector<8x256xf32>, i32 -> vector<8x256xf32>
    %114 = arith.select %7, %112, %113 : vector<8x256xi1>, vector<8x256xf32>
    %115 = arith.minimumf %103, %114 : vector<8x256xf32>
    %c240_i32_60 = arith.constant 240 : i32
    %116 = tpu.dynamic_rotate %115 by %c240_i32_60 dim 1 : vector<8x256xf32>, i32 -> vector<8x256xf32>
    %c16_i32_61 = arith.constant 16 : i32
    %117 = tpu.dynamic_rotate %115 by %c16_i32_61 dim 1 : vector<8x256xf32>, i32 -> vector<8x256xf32>
    %118 = arith.select %11, %116, %117 : vector<8x256xi1>, vector<8x256xf32>
    %119 = arith.minimumf %115, %118 : vector<8x256xf32>
    %cst_62 = arith.constant dense<0xFF800000> : vector<8xf32>
    %120 = vector.multi_reduction <maximumf>, %111, %cst_62 [1] : vector<8x256xf32> to vector<8xf32>
    %121 = vector.shape_cast %120 : vector<8xf32> to vector<8x1xf32>
    %122 = vector.broadcast %121 : vector<8x1xf32> to vector<8x256xf32>
    %123 = arith.subf %111, %122 : vector<8x256xf32>
    %124 = math.exp %123 : vector<8x256xf32>
    %cst_63 = arith.constant dense<0.000000e+00> : vector<8xf32>
    %125 = vector.multi_reduction <add>, %124, %cst_63 [1] : vector<8x256xf32> to vector<8xf32>
    %126 = vector.shape_cast %125 : vector<8xf32> to vector<8x1xf32>
    %127 = tpu.reciprocal %126 {approx = true} : vector<8x1xf32> -> vector<8x1xf32>
    %cst_64 = arith.constant dense<0xFF800000> : vector<8xf32>
    %128 = vector.multi_reduction <maximumf>, %119, %cst_64 [1] : vector<8x256xf32> to vector<8xf32>
    %129 = vector.shape_cast %128 : vector<8xf32> to vector<8x1xf32>
    %130 = vector.broadcast %129 : vector<8x1xf32> to vector<8x256xf32>
    %131 = arith.subf %119, %130 : vector<8x256xf32>
    %132 = math.exp %131 : vector<8x256xf32>
    %cst_65 = arith.constant dense<0.000000e+00> : vector<8xf32>
    %133 = vector.multi_reduction <add>, %132, %cst_65 [1] : vector<8x256xf32> to vector<8xf32>
    %134 = vector.shape_cast %133 : vector<8xf32> to vector<8x1xf32>
    %135 = tpu.reciprocal %134 {approx = true} : vector<8x1xf32> -> vector<8x1xf32>
    %cst_66 = arith.constant dense<0.000000e+00> : vector<8x4xf32>
    %136 = tpu.matmul %124, %0, %cst_66 {dimension_numbers = #tpu.dot_dimension_numbers<[1], [1], [0], [0], [0, 0, 1, 0], [], []>} : vector<8x256xf32>, vector<4x256xf32>, vector<8x4xf32> -> vector<8x4xf32>
    %137 = vector.broadcast %127 : vector<8x1xf32> to vector<8x4xf32>
    %138 = arith.mulf %136, %137 : vector<8x4xf32>
    %cst_67 = arith.constant 0.000000e+00 : f32
    %139 = vector.broadcast %cst_67 : f32 to vector<8x4xf32>
    %140 = arith.maximumf %138, %139 : vector<8x4xf32>
    %cst_68 = arith.constant dense<0.000000e+00> : vector<8x4xf32>
    %141 = tpu.matmul %132, %0, %cst_68 {dimension_numbers = #tpu.dot_dimension_numbers<[1], [1], [0], [0], [0, 0, 1, 0], [], []>} : vector<8x256xf32>, vector<4x256xf32>, vector<8x4xf32> -> vector<8x4xf32>
    %142 = vector.broadcast %135 : vector<8x1xf32> to vector<8x4xf32>
    %143 = arith.mulf %141, %142 : vector<8x4xf32>
    %cst_69 = arith.constant 0.000000e+00 : f32
    %144 = vector.broadcast %cst_69 : f32 to vector<8x4xf32>
    %145 = arith.maximumf %143, %144 : vector<8x4xf32>
    %146 = vector.extract_strided_slice %140 {offsets = [0, 0], sizes = [1, 4], strides = [1, 1]} : vector<8x4xf32> to vector<1x4xf32>
    %c0_70 = arith.constant 0 : index
    %c0_71 = arith.constant 0 : index
    %147 = vector.load %arg6[%c0_70, %c0_71] : memref<1x64xf32, #tpu.memory_space<vmem>>, vector<1x4xf32>
    tpu.vector_store %arg6[%c0_70, %c0_71], %146 {strides = array<i32>} : memref<1x64xf32, #tpu.memory_space<vmem>>, vector<1x4xf32>,
    %148 = vector.extract_strided_slice %145 {offsets = [0, 0], sizes = [1, 4], strides = [1, 1]} : vector<8x4xf32> to vector<1x4xf32>
    %c0_72 = arith.constant 0 : index
    %c32 = arith.constant 32 : index
    %149 = vector.load %arg6[%c0_72, %c32] : memref<1x64xf32, #tpu.memory_space<vmem>>, vector<1x4xf32>
    tpu.vector_store %arg6[%c0_72, %c32], %148 {strides = array<i32>} : memref<1x64xf32, #tpu.memory_space<vmem>>, vector<1x4xf32>,
    %150 = vector.extract_strided_slice %140 {offsets = [1, 0], sizes = [1, 4], strides = [1, 1]} : vector<8x4xf32> to vector<1x4xf32>
    %c0_73 = arith.constant 0 : index
    %c4_74 = arith.constant 4 : index
    %151 = vector.load %arg6[%c0_73, %c4_74] : memref<1x64xf32, #tpu.memory_space<vmem>>, vector<1x4xf32>
    tpu.vector_store %arg6[%c0_73, %c4_74], %150 {strides = array<i32>} : memref<1x64xf32, #tpu.memory_space<vmem>>, vector<1x4xf32>,
    %152 = vector.extract_strided_slice %145 {offsets = [1, 0], sizes = [1, 4], strides = [1, 1]} : vector<8x4xf32> to vector<1x4xf32>
    %c0_75 = arith.constant 0 : index
    %c36 = arith.constant 36 : index
    %153 = vector.load %arg6[%c0_75, %c36] : memref<1x64xf32, #tpu.memory_space<vmem>>, vector<1x4xf32>
    tpu.vector_store %arg6[%c0_75, %c36], %152 {strides = array<i32>} : memref<1x64xf32, #tpu.memory_space<vmem>>, vector<1x4xf32>,
    %154 = vector.extract_strided_slice %140 {offsets = [2, 0], sizes = [1, 4], strides = [1, 1]} : vector<8x4xf32> to vector<1x4xf32>
    %c0_76 = arith.constant 0 : index
    %c8_77 = arith.constant 8 : index
    %155 = vector.load %arg6[%c0_76, %c8_77] : memref<1x64xf32, #tpu.memory_space<vmem>>, vector<1x4xf32>
    tpu.vector_store %arg6[%c0_76, %c8_77], %154 {strides = array<i32>} : memref<1x64xf32, #tpu.memory_space<vmem>>, vector<1x4xf32>,
    %156 = vector.extract_strided_slice %145 {offsets = [2, 0], sizes = [1, 4], strides = [1, 1]} : vector<8x4xf32> to vector<1x4xf32>
    %c0_78 = arith.constant 0 : index
    %c40 = arith.constant 40 : index
    %157 = vector.load %arg6[%c0_78, %c40] : memref<1x64xf32, #tpu.memory_space<vmem>>, vector<1x4xf32>
    tpu.vector_store %arg6[%c0_78, %c40], %156 {strides = array<i32>} : memref<1x64xf32, #tpu.memory_space<vmem>>, vector<1x4xf32>,
    %158 = vector.extract_strided_slice %140 {offsets = [3, 0], sizes = [1, 4], strides = [1, 1]} : vector<8x4xf32> to vector<1x4xf32>
    %c0_79 = arith.constant 0 : index
    %c12 = arith.constant 12 : index
    %159 = vector.load %arg6[%c0_79, %c12] : memref<1x64xf32, #tpu.memory_space<vmem>>, vector<1x4xf32>
    tpu.vector_store %arg6[%c0_79, %c12], %158 {strides = array<i32>} : memref<1x64xf32, #tpu.memory_space<vmem>>, vector<1x4xf32>,
    %160 = vector.extract_strided_slice %145 {offsets = [3, 0], sizes = [1, 4], strides = [1, 1]} : vector<8x4xf32> to vector<1x4xf32>
    %c0_80 = arith.constant 0 : index
    %c44 = arith.constant 44 : index
    %161 = vector.load %arg6[%c0_80, %c44] : memref<1x64xf32, #tpu.memory_space<vmem>>, vector<1x4xf32>
    tpu.vector_store %arg6[%c0_80, %c44], %160 {strides = array<i32>} : memref<1x64xf32, #tpu.memory_space<vmem>>, vector<1x4xf32>,
    %162 = vector.extract_strided_slice %140 {offsets = [4, 0], sizes = [1, 4], strides = [1, 1]} : vector<8x4xf32> to vector<1x4xf32>
    %c0_81 = arith.constant 0 : index
    %c16 = arith.constant 16 : index
    %163 = vector.load %arg6[%c0_81, %c16] : memref<1x64xf32, #tpu.memory_space<vmem>>, vector<1x4xf32>
    tpu.vector_store %arg6[%c0_81, %c16], %162 {strides = array<i32>} : memref<1x64xf32, #tpu.memory_space<vmem>>, vector<1x4xf32>,
    %164 = vector.extract_strided_slice %145 {offsets = [4, 0], sizes = [1, 4], strides = [1, 1]} : vector<8x4xf32> to vector<1x4xf32>
    %c0_82 = arith.constant 0 : index
    %c48 = arith.constant 48 : index
    %165 = vector.load %arg6[%c0_82, %c48] : memref<1x64xf32, #tpu.memory_space<vmem>>, vector<1x4xf32>
    tpu.vector_store %arg6[%c0_82, %c48], %164 {strides = array<i32>} : memref<1x64xf32, #tpu.memory_space<vmem>>, vector<1x4xf32>,
    %166 = vector.extract_strided_slice %140 {offsets = [5, 0], sizes = [1, 4], strides = [1, 1]} : vector<8x4xf32> to vector<1x4xf32>
    %c0_83 = arith.constant 0 : index
    %c20 = arith.constant 20 : index
    %167 = vector.load %arg6[%c0_83, %c20] : memref<1x64xf32, #tpu.memory_space<vmem>>, vector<1x4xf32>
    tpu.vector_store %arg6[%c0_83, %c20], %166 {strides = array<i32>} : memref<1x64xf32, #tpu.memory_space<vmem>>, vector<1x4xf32>,
    %168 = vector.extract_strided_slice %145 {offsets = [5, 0], sizes = [1, 4], strides = [1, 1]} : vector<8x4xf32> to vector<1x4xf32>
    %c0_84 = arith.constant 0 : index
    %c52 = arith.constant 52 : index
    %169 = vector.load %arg6[%c0_84, %c52] : memref<1x64xf32, #tpu.memory_space<vmem>>, vector<1x4xf32>
    tpu.vector_store %arg6[%c0_84, %c52], %168 {strides = array<i32>} : memref<1x64xf32, #tpu.memory_space<vmem>>, vector<1x4xf32>,
    %170 = vector.extract_strided_slice %140 {offsets = [6, 0], sizes = [1, 4], strides = [1, 1]} : vector<8x4xf32> to vector<1x4xf32>
    %c0_85 = arith.constant 0 : index
    %c24 = arith.constant 24 : index
    %171 = vector.load %arg6[%c0_85, %c24] : memref<1x64xf32, #tpu.memory_space<vmem>>, vector<1x4xf32>
    tpu.vector_store %arg6[%c0_85, %c24], %170 {strides = array<i32>} : memref<1x64xf32, #tpu.memory_space<vmem>>, vector<1x4xf32>,
    %172 = vector.extract_strided_slice %145 {offsets = [6, 0], sizes = [1, 4], strides = [1, 1]} : vector<8x4xf32> to vector<1x4xf32>
    %c0_86 = arith.constant 0 : index
    %c56 = arith.constant 56 : index
    %173 = vector.load %arg6[%c0_86, %c56] : memref<1x64xf32, #tpu.memory_space<vmem>>, vector<1x4xf32>
    tpu.vector_store %arg6[%c0_86, %c56], %172 {strides = array<i32>} : memref<1x64xf32, #tpu.memory_space<vmem>>, vector<1x4xf32>,
    %174 = vector.extract_strided_slice %140 {offsets = [7, 0], sizes = [1, 4], strides = [1, 1]} : vector<8x4xf32> to vector<1x4xf32>
    %c0_87 = arith.constant 0 : index
    %c28 = arith.constant 28 : index
    %175 = vector.load %arg6[%c0_87, %c28] : memref<1x64xf32, #tpu.memory_space<vmem>>, vector<1x4xf32>
    tpu.vector_store %arg6[%c0_87, %c28], %174 {strides = array<i32>} : memref<1x64xf32, #tpu.memory_space<vmem>>, vector<1x4xf32>,
    %176 = vector.extract_strided_slice %145 {offsets = [7, 0], sizes = [1, 4], strides = [1, 1]} : vector<8x4xf32> to vector<1x4xf32>
    %c0_88 = arith.constant 0 : index
    %c60 = arith.constant 60 : index
    %177 = vector.load %arg6[%c0_88, %c60] : memref<1x64xf32, #tpu.memory_space<vmem>>, vector<1x4xf32>
    tpu.vector_store %arg6[%c0_88, %c60], %176 {strides = array<i32>} : memref<1x64xf32, #tpu.memory_space<vmem>>, vector<1x4xf32>,
    %c0_89 = arith.constant 0 : index
    %c0_90 = arith.constant 0 : index
    %178 = vector.load %arg6[%c0_89, %c0_90] : memref<1x64xf32, #tpu.memory_space<vmem>>, vector<1x64xf32>
    %c0_91 = arith.constant 0 : index
    %c0_92 = arith.constant 0 : index
    %179 = vector.load %arg3[%c0_91, %c0_92] : memref<64x10xf32, #tpu.memory_space<vmem>>, vector<64x10xf32>
    %cst_93 = arith.constant dense<0.000000e+00> : vector<1x10xf32>
    %180 = tpu.matmul %178, %179, %cst_93 {dimension_numbers = #tpu.dot_dimension_numbers<[1], [0], [0], [1], [0, 0, 1, 1], [], []>} : vector<1x64xf32>, vector<64x10xf32>, vector<1x10xf32> -> vector<1x10xf32>
    %c0_94 = arith.constant 0 : index
    %c0_95 = arith.constant 0 : index
    %181 = vector.load %arg4[%c0_94, %c0_95] : memref<1x10xf32, #tpu.memory_space<vmem>>, vector<1x10xf32>
    %182 = arith.addf %180, %181 : vector<1x10xf32>
    %c0_96 = arith.constant 0 : index
    %c0_97 = arith.constant 0 : index
    %183 = vector.load %arg5[%c0_96, %c0_97] : memref<1x10xf32, #tpu.memory_space<vmem>>, vector<1x10xf32>
    tpu.vector_store %arg5[%c0_96, %c0_97], %182 {strides = array<i32>} : memref<1x10xf32, #tpu.memory_space<vmem>>, vector<1x10xf32>,
    return
  }
}

</mosaic_0001>

<bundles_post_ra>
// kernel: squeeze.2
= control target key start
LH: loop header
LB: loop body
LE: loop exit
PB: predicated region body
PF: predicated region fallthrough
CT: control target
= control target key end

     0   :  { %2 = vsyncpa [#allocation1], 0  ;;  %s237_s6 = smov [#allocation0]   ;;  %s295_s0 = inlined_call_operand.hbm [shape: f32[1,4,16,16], index: 0, kind: input, shape index: {}]   ;;  %s296_s1 = inlined_call_operand.vmem [shape: f32[4,256], index: 1, kind: output, shape index: {}]  }
   0x1   :  { %s7_s7 = sshll.u32 %s237_s6, 4  ;;  %s213_s10 = scalar_lea.hbm %s295_s0, 1024  ;;  %s8_s7 = int_to_ptr.vmem [resolvable:$true] %s7_s7 }
   0x2   :  { %p214_p0 = scmp.ne.s32.totalorder %s295_s0, %s213_s10  ;;  %p217_p1 = scmp.lt.u32.totalorder %s213_s10, %s295_s0 }
   0x4   :  { %p219_p2 = pnand %p217_p1, %p214_p0 }
   0x6   :  { %222 = shalt.err (!%p219_p2)
}
   0x7   :  { %s223_s15 = scalar_lea.vmem %s8_s7, 1024  ;;  %p228_p4 = scmp.lt.s32.totalorder %s8_s7, %s8_s7 }
   0x8   :  { %p224_p3 = scmp.ne.s32.totalorder %s8_s7, %s223_s15  ;;  %p229_p5 = scmp.lt.s32.totalorder %s223_s15, %s223_s15 }
   0xa   :  { %p230_p6 = por %p229_p5, %p228_p4 }
   0xc   :  { %p231_p7 = pnand %p230_p6, %p224_p3 }
   0xe   :  { %234 = shalt.err (!%p231_p7)
}
   0xf   :  { %10 = dma.hbm_to_vmem [thread:$0]  %s295_s0, 1024, %s8_s7, [#allocation1]  }
  0x10   :  { %235 = dma.done.wait [#allocation1], 1024  }
  0x11   :  { %236 = vsyncadd [#allocation1], 4294966272  ;;  %s25_s0 = smov 3  ;;  %s28_s18 = smov 12  ;;  %vm30_vm0 = vcmask 1043458   ;;  %vm35_vm1 = vcmask 1045508  }
  0x12   :  { %s33_s19 = smov 48  ;;  %s38_s20 = smov 192  ;;  %vm40_vm2 = vcmask 1047558   ;;  %v26_v0 = vld [vmem:[#allocation0 + $0x7] ss:$16 sm:%s25_s0]   ;;  %vm14_vm3 = vcmask 1047556  }
  0x13   :  { %s73_s21 = smov 3  ;;  %s76_s22 = smov 12  ;;  %v29_v1 = vld [vmem:[#allocation0 + $0x7] ss:$16 sm:%s28_s18]   ;;  %v34_v2 = vld [vmem:[#allocation0 - $0x31] ss:$16 sm:%s33_s19]  }
  0x14   :  { %s81_s23 = smov 48  ;;  %s86_s24 = smov 192  ;;  %v31_v3 = vsel %vm30_vm0, %v29_v1, %v26_v0  ;;  %v39_v4 = vld [vmem:[#allocation0 - $0x31] ss:$16 sm:%s38_s20]   ;;  %v74_v5 = vld [vmem:[#allocation0 + $0x5] ss:$16 sm:%s73_s21]  }
  0x15   :  { %s49_s25 = smov 3  ;;  %s52_s26 = smov 12  ;;  %v77_v6 = vld [vmem:[#allocation0 + $0x5] ss:$16 sm:%s76_s22]   ;;  %v36_v7 = vsel %vm35_vm1, %v34_v2, %v31_v3  ;;  %v82_v9 = vld [vmem:[#allocation0 - $0x33] ss:$16 sm:%s81_s23]  }
  0x16   :  { %s57_s27 = smov 48  ;;  %s62_s28 = smov 192  ;;  %v79_v8 = vsel %vm30_vm0, %v77_v6, %v74_v5  ;;  %v87_v10 = vld [vmem:[#allocation0 - $0x33] ss:$16 sm:%s86_s24]   ;;  %v50_v11 = vld [vmem:[#allocation0 + $0x6] ss:$16 sm:%s49_s25]   ;;  %v41_v12 = vsel %vm40_vm2, %v39_v4, %v36_v7 }
  0x17   :  { %v84_v13 = vsel %vm35_vm1, %v82_v9, %v79_v8  ;;  %v53_v14 = vld [vmem:[#allocation0 + $0x6] ss:$16 sm:%s52_s26]   ;;  %v58_v15 = vld [vmem:[#allocation0 - $0x32] ss:$16 sm:%s57_s27]   ;;  %s238_s29 = smov 112   ;;  %s97_s30 = smov 3 }
  0x18   :  { %v63_v16 = vld [vmem:[#allocation0 - $0x32] ss:$16 sm:%s62_s28]   ;;  %42 = vrot.lane.b32.xlu0 %v41_v12, %s238_s29  ;;  %v89_v17 = vsel %vm40_vm2, %v87_v10, %v84_v13  ;;  %v55_v18 = vsel %vm30_vm0, %v53_v14, %v50_v11  ;;  %s239_s2 = smov 80   ;;  %v98_v20 = vld [vmem:[#allocation0 + $0x4] ss:$16 sm:%s97_s30]   ;;  %s100_s3 = smov 12 }
  0x19   :  { %90 = vrot.lane.b32.xlu1 %v89_v17, %s239_s2  ;;  %v60_v19 = vsel %vm35_vm1, %v58_v15, %v55_v18  ;;  %s105_s4 = smov 48  ;;  %v101_v22 = vld [vmem:[#allocation0 + $0x4] ss:$16 sm:%s100_s3]   ;;  %s110_s5 = smov 192  ;;  %vm16_vm4 = vcmask 130048   ;;  %vm44_vm5 = vcmask 1048448  }
  0x1a   :  { %v65_v21 = vsel %vm40_vm2, %v63_v16, %v60_v19  ;;  %v106_v23 = vld [vmem:[#allocation0 - $0x34] ss:$16 sm:%s105_s4]   ;;  %v103_v24 = vsel %vm30_vm0, %v101_v22, %v98_v20  ;;  %s121_s6 = smov 3  ;;  %s124_s7 = smov 12  ;;  %vm68_vm6 = vcmask 917248   ;;  %vm92_vm7 = vcmask 786048  }
  0x1b   :  { %v111_v25 = vld [vmem:[#allocation0 - $0x34] ss:$16 sm:%s110_s5]   ;;  %s240_s8 = smov 96   ;;  %v108_v26 = vsel %vm35_vm1, %v106_v23, %v103_v24  ;;  %v122_v27 = vld [vmem:[#allocation0 + $0x3] ss:$16 sm:%s121_s6]   ;;  %s129_s9 = smov 48 }
  0x1c   :  { %66 = vrot.lane.b32.xlu0 %v65_v21, %s240_s8  ;;  %v125_v28 = vld [vmem:[#allocation0 + $0x3] ss:$16 sm:%s124_s7]   ;;  %s134_s10 = smov 192  ;;  %v113_v29 = vsel %vm40_vm2, %v111_v25, %v108_v26  ;;  %v130_v31 = vld [vmem:[#allocation0 - $0x35] ss:$16 sm:%s129_s9]   ;;  %s145_s11 = smov 3 }
  0x1d   :  { %v127_v30 = vsel %vm30_vm0, %v125_v28, %v122_v27  ;;  %v135_v32 = vld [vmem:[#allocation0 - $0x35] ss:$16 sm:%s134_s10]   ;;  %s241_s12 = smov 64   ;;  %v146_v34 = vld [vmem:[#allocation0 + $0x2] ss:$16 sm:%s145_s11]   ;;  %s148_s13 = smov 12 }
  0x1e   :  { %114 = vrot.lane.b32.xlu1 %v113_v29, %s241_s12  ;;  %v132_v33 = vsel %vm35_vm1, %v130_v31, %v127_v30  ;;  %s153_s14 = smov 48  ;;  %v149_v36 = vld [vmem:[#allocation0 + $0x2] ss:$16 sm:%s148_s13]   ;;  %s158_s15 = smov 192  ;;  %vm116_vm8 = vcmask 654848   ;;  %vm140_vm9 = vcmask 523648  }
  0x1f   :  { %v137_v35 = vsel %vm40_vm2, %v135_v32, %v132_v33  ;;  %v154_v37 = vld [vmem:[#allocation0 - $0x36] ss:$16 sm:%s153_s14]   ;;  %v12_v38 = vld [vmem:[#allocation0] ss:$8 sm:$0xf]   ;;  %s242_s16 = smov 48   ;;  %v151_v39 = vsel %vm30_vm0, %v149_v36, %v146_v34 }
  0x20   :  { %138 = vrot.lane.b32.xlu0 %v137_v35, %s242_s16  ;;  %v159_v40 = vld [vmem:[#allocation0 - $0x36] ss:$16 sm:%s158_s15]   ;;  %s169_s17 = smov 3  ;;  %s172_s0 = smov 12  ;;  %v156_v41 = vsel %vm35_vm1, %v154_v37, %v151_v39  ;;  %vm164_vm10 = vcmask 392448   ;;  %vm188_vm11 = vcmask 261248  }
  0x21   :  { %v170_v42 = vld [vmem:[#allocation0 + $0x1] ss:$16 sm:%s169_s17]   ;;  %s177_s18 = smov 48  ;;  %s182_s19 = smov 192  ;;  %v161_v44 = vsel %vm40_vm2, %v159_v40, %v156_v41 }
  0x22   :  { %v173_v43 = vld [vmem:[#allocation0 + $0x1] ss:$16 sm:%s172_s0]   ;;  %v178_v46 = vld [vmem:[#allocation0 - $0x37] ss:$16 sm:%s177_s18]   ;;  %s243_s20 = smov 32   ;;  %s244_s21 = smov 16  }
  0x23   :  { %v175_v45 = vsel %vm30_vm0, %v173_v43, %v170_v42  ;;  %v183_v47 = vld [vmem:[#allocation0 - $0x37] ss:$16 sm:%s182_s19]   ;;  %162 = vrot.lane.b32.xlu1 %v161_v44, %s243_s20  ;;  %v13_v49 = vld [vmem:[#allocation0] ss:$8 sm:$0xf0]  }
  0x24   :  { %v180_v48 = vsel %vm35_vm1, %v178_v46, %v175_v45  ;;  %v15_v51 = vsel %vm14_vm3, %v13_v49, %v12_v38 }
  0x25   :  { %v185_v50 = vsel %vm40_vm2, %v183_v47, %v180_v48  ;;  %17 = vst.msk [vmem:[#allocation2] ss:$8 sm:$0x3] %vm16_vm4, %v15_v51   ;;  %19 = vst.msk [vmem:[#allocation2 - $0xf] ss:$8 sm:$0xc] %vm16_vm4, %v15_v51  }
  0x26   :  { %186 = vrot.lane.b32.xlu0 %v185_v50, %s244_s21  ;;  %21 = vst.msk [vmem:[#allocation2 - $0x1e] ss:$8 sm:$0x30] %vm16_vm4, %v15_v51   ;;  %23 = vst.msk [vmem:[#allocation2 - $0x2d] ss:$8 sm:$0xc0] %vm16_vm4, %v15_v51  }
  0x8a   :  { %v43_v52 = vpop.permute.xlu0 %42  }
  0x8b   :  { %v91_v53 = vpop.permute.xlu1 %90   ;;  %45 = vst.msk [vmem:[#allocation2] sm:$0xf] %vm44_vm5, %v43_v52   ;;  %47 = vst.msk [vmem:[#allocation2 + $0x4] sm:$0xf0] %vm44_vm5, %v43_v52  }
  0x8e   :  { %v67_v54 = vpop.permute.xlu0 %66  }
  0x8f   :  { %69 = vst.msk [vmem:[#allocation2] sm:$0xf] %vm68_vm6, %v67_v54   ;;  %71 = vst.msk [vmem:[#allocation2 + $0x4] sm:$0xf0] %vm68_vm6, %v67_v54  }
  0x90   :  { %93 = vst.msk [vmem:[#allocation2] sm:$0xf] %vm92_vm7, %v91_v53   ;;  %95 = vst.msk [vmem:[#allocation2 + $0x4] sm:$0xf0] %vm92_vm7, %v91_v53   ;;  %v115_v55 = vpop.permute.xlu1 %114  }
  0x91   :  { %117 = vst.msk [vmem:[#allocation2] sm:$0xf] %vm116_vm8, %v115_v55   ;;  %119 = vst.msk [vmem:[#allocation2 + $0x4] sm:$0xf0] %vm116_vm8, %v115_v55  }
  0x92   :  { %v139_v56 = vpop.permute.xlu0 %138  }
  0x93   :  { %141 = vst.msk [vmem:[#allocation2] sm:$0xf] %vm140_vm9, %v139_v56   ;;  %143 = vst.msk [vmem:[#allocation2 + $0x4] sm:$0xf0] %vm140_vm9, %v139_v56  }
  0x95   :  { %v163_v57 = vpop.permute.xlu1 %162  }
  0x96   :  { %165 = vst.msk [vmem:[#allocation2] sm:$0xf] %vm164_vm10, %v163_v57   ;;  %167 = vst.msk [vmem:[#allocation2 + $0x4] sm:$0xf0] %vm164_vm10, %v163_v57  }
  0x98   :  { %v187_v58 = vpop.permute.xlu0 %186  }
  0x99   :  { %189 = vst.msk [vmem:[#allocation2] sm:$0xf] %vm188_vm11, %v187_v58   ;;  %191 = vst.msk [vmem:[#allocation2 + $0x4] sm:$0xf0] %vm188_vm11, %v187_v58  }
  0xa0   :  { %v195_v59 = vld [vmem:[#allocation2] sm:$0xf]  ;;  %v199_v60 = vld [vmem:[#allocation2 + $0x8] sm:$0xf] }
  0xa1   :  { %197 = vst [vmem:[%s296_s1] sm:$0xf] %v195_v59  ;;  %204 = vst [vmem:[%s296_s1 + $0x4] sm:$0xf] %v199_v60 }
  0xa2   :  { %203 = vsyncpa [#allocation1], 1 }

// kernel: attention_model_forward.1
= control target key start
LH: loop header
LB: loop body
LE: loop exit
PB: predicated region body
PF: predicated region fallthrough
CT: control target
= control target key end

     0   :  { %vm42_vm0 = vcmask 1043456   ;;  %v1381_v2 = vmov 0.0   ;;  %vm38_vm1 = vcmask 31744   ;;  %s1715_s0 = inlined_call_operand.vmem [shape: f32[4,256], index: 0, kind: input, shape index: {}]   ;;  %s1716_s1 = inlined_call_operand.vmem [shape: f32[9,8,4], index: 1, kind: input, shape index: {}]   ;;  %s1717_s2 = inlined_call_operand.vmem [shape: f32[8,1], index: 2, kind: input, shape index: {}]   ;;  %s1718_s3 = inlined_call_operand.vmem [shape: f32[64,10], index: 3, kind: input, shape index: {}]   ;;  %s1719_s4 = inlined_call_operand.vmem [shape: f32[1,10], index: 4, kind: input, shape index: {}]   ;;  %s1720_s5 = inlined_call_operand.hbm [shape: f32[1,10], index: 5, kind: output, shape index: {}]  }
   0x1   :  { %v21_v0 = vld [vmem:[%s1715_s0] sm:$0xff]  ;;  %111 = vmatprep.mubr.f32.mxu0 %v1381_v2  ;;  %382 = vmatprep.mubr.f32.mxu1 %v1381_v2  ;;  %v1251_v4 = vld [vmem:[%s1716_s1 + $0x18] sm:$0xff] }
   0x2   :  { %v37_v1 = vcombine.high %v21_v0, %v21_v0  ;;  %v35_v3 = vld [vmem:[%s1716_s1] sm:$0xff] }
   0x4   :  { %1240 = vmatprep.subr.msk.mxu0 %vm42_vm0, %v37_v1  ;;  %1252 = vmatprep.subr.msk.mxu1 %vm42_vm0, %v37_v1 }
   0x5   :  { %10 = vsyncpa [#allocation4], 0  ;;  %1241 = vmatpush1.msk.msra.mxu0 %vm42_vm0, %v21_v0  ;;  %1253 = vmatpush1.msk.msra.mxu1 %vm42_vm0, %v21_v0  ;;  %v1243_v5 = vld [vmem:[%s1716_s1 + $0x8] sm:$0xff]  ;;  %v1247_v7 = vld [vmem:[%s1716_s1 + $0x10] sm:$0xff]  ;;  %v1382_v12 = vmov 0   ;;  %s1383_s12 = smov 17   ;;  %v22_v34 = vlaneseq }
   0x6   :  { %1242 = vmatmul.mubr.msk.f32.vlgmr.msra.gmra.mrb[0].mxu0 %vm38_vm1, %v35_v3  ;;  %1254 = vmatmul.mubr.msk.f32.vlgmr.msra.gmra.mrb[0].mxu1 %vm38_vm1, %v1251_v4  ;;  %v1259_v6 = vld [vmem:[%s1716_s1 + $0x28] sm:$0xff]  ;;  %v1267_v8 = vld [vmem:[%s1716_s1 + $0x38] sm:$0xff]  ;;  %v1255_v9 = vld [vmem:[%s1716_s1 + $0x20] sm:$0xff]  ;;  %s1384_s13 = smov 1   ;;  %s1386_s14 = smov 127  }
   0x7   :  { %1244 = vmatprep.subr.msk.mxu0 %vm42_vm0, %v37_v1  ;;  %204 = vmatprep.mubr.f32.mxu0 %v1381_v2  ;;  %v1263_v10 = vld [vmem:[%s1716_s1 + $0x30] sm:$0xff]  ;;  %v1271_v11 = vld [vmem:[%s1716_s1 + $0x40] sm:$0xff]  ;;  %s1385_s1 = smov 16   ;;  %s1387_s15 = smov 15   ;;  %v1519_v37 = vand.u32 127, %v22_v34 }
   0x8   :  { %1245 = vmatpush1.msk.msra.mxu0 %vm42_vm0, %v21_v0  ;;  %1260 = vmatprep.subr.msk.mxu1 %vm42_vm0, %v37_v1  ;;  %s1388_s16 = smov 112   ;;  %v832_v29 = vld [vmem:[%s1717_s2] sm:$0xff]  ;;  %s1389_s19 = smov 113  }
   0x9   :  { %1261 = vmatpush1.msk.msra.mxu1 %vm42_vm0, %v21_v0  ;;  %547 = vmatprep.mubr.f32.mxu1 %v1381_v2  ;;  %s1390_s20 = smov 111   ;;  %v1522_v40 = vadd.s32 128, %v1519_v37  ;;  %v25_v41 = vand.u32 15, %v1519_v37  ;;  %vm122_vm2 = vcmp.lt.s32.totalorder %v1519_v37, 17  ;;  %vm125_vm3 = vcmp.ge.s32.totalorder %v1519_v37, 16  ;;  %s1391_s2 = smov 32  }
   0xa   :  { %1246 = vmatmul.mubr.msk.f32.vlgmr.msra.gmra.mrb[2].mxu0 %vm38_vm1, %v1243_v5  ;;  %1248 = vmatprep.subr.msk.mxu0 %vm42_vm0, %v37_v1  ;;  %vm215_vm4 = vcmp.lt.s32.totalorder %v1519_v37, 16  ;;  %vm302_vm8 = vcmp.lt.s32.totalorder %v1519_v37, 15  ;;  %vm393_vm12 = vcmp.lt.s32.totalorder %v1519_v37, 1  ;;  %vm558_vm13 = vcmp.lt.s32.totalorder %v1519_v37, 127  ;;  %s1392_s21 = smov 36   ;;  %s1393_s22 = smov 8  }
   0xb   :  { %1262 = vmatmul.mubr.msk.f32.vlgmr.msra.gmra.mrb[2].mxu1 %vm38_vm1, %v1259_v6  ;;  %1249 = vmatpush1.msk.msra.mxu0 %vm42_vm0, %v21_v0  ;;  %v26_v44 = vand.u32 15, %v1522_v40  ;;  %vm1529_vm5 = vcmp.ge.s32.totalorder %v25_v41, 1  ;;  %vm1543_vm7 = vcmp.le.s32.totalorder %v25_v41, 14  ;;  %vm736_vm14 = vcmp.lt.s32.totalorder %v1519_v37, 112  ;;  %s1394_s23 = smov 4   ;;  %s1396_s27 = smov 12  }
   0xc   :  { %291 = vmatprep.mubr.f32.mxu0 %v1381_v2  ;;  %1268 = vmatprep.subr.msk.mxu1 %vm42_vm0, %v37_v1  ;;  %vm1537_vm6 = vmand %vm125_vm3, %vm1529_vm5  ;;  %vm649_vm15 = vcmp.lt.s32.totalorder %v1522_v40, 240  ;;  %s1397_s28 = smov 40   ;;  %s1398_s8 = smov 44  }
   0xd   :  { %1269 = vmatpush1.msk.msra.mxu1 %vm42_vm0, %v21_v0  ;;  %725 = vmatprep.mubr.f32.mxu1 %v1381_v2  ;;  %vm1548_vm9 = vcmp.ge.s32.totalorder %v26_v44, 1  ;;  %vm1556_vm10 = vmand %vm125_vm3, %vm1543_vm7  ;;  %vm1568_vm11 = vcmp.le.s32.totalorder %v26_v44, 14  ;;  %s1400_s17 = smov 48   ;;  %s1402_s18 = smov 24  }
   0xe   :  { %1250 = vmatmul.mubr.msk.f32.vlgmr.msra.gmra.mrb[4].mxu0 %vm38_vm1, %v1247_v7  ;;  %1256 = vmatprep.subr.msk.mxu0 %vm42_vm0, %v37_v1 }
   0xf   :  { %1270 = vmatmul.mubr.msk.f32.vlgmr.msra.gmra.mrb[4].mxu1 %vm38_vm1, %v1267_v8  ;;  %1257 = vmatpush1.msk.msra.mxu0 %vm42_vm0, %v21_v0 }
  0x10   :  { %469 = vmatprep.mubr.f32.mxu0 %v1381_v2  ;;  %1264 = vmatprep.subr.msk.mxu0 %vm42_vm0, %v37_v1 }
  0x11   :  { %917 = vmatprep.subr.mxu1 %v37_v1  ;;  %1343 = vset.pattern.permute.xlu0 %v1382_v12 }
  0x12   :  { %1258 = vmatmul.mubr.msk.f32.vlgmr.msra.gmra.mrb[6].mxu0 %vm38_vm1, %v1255_v9 }
  0x13   :  { %1265 = vmatpush1.msk.msra.mxu0 %vm42_vm0, %v21_v0  ;;  %634 = vmatprep.mubr.f32.mxu0 %v1381_v2 }
  0x14   :  { %1272 = vmatprep.subr.msk.mxu0 %vm42_vm0, %v37_v1  ;;  %918 = vmatpush1.xpose.msra.mxu1 %v21_v0 }
  0x16   :  { %1266 = vmatmul.mubr.msk.f32.vlgmr.msra.gmra.mrb[8].mxu0 %vm38_vm1, %v1263_v10 }
  0x17   :  { %1273 = vmatpush1.msk.msra.mxu0 %vm42_vm0, %v21_v0  ;;  %812 = vmatprep.mubr.f32.mxu0 %v1381_v2  ;;  %vm645_vm0 = vcmp.lt.s32.totalorder %v1519_v37, 113 }
  0x18   :  { %989 = vmatprep.subr.mxu0 %v37_v1 }
  0x1a   :  { %1274 = vmatmul.mubr.msk.f32.vlgmr.msra.gmra.mrb[10].mxu0 %vm38_vm1, %v1271_v11  ;;  %vm651_vm1 = vmand %vm649_vm15, %vm1548_vm9 }
  0x1e   :  { %990 = vmatpush1.xpose.msra.mxu0 %v21_v0 }
  0xd9   :  { %v113_v13 = vpop.f32.mrb[0].mxu0  ;;  %v384_v14 = vpop.f32.mrb[0].mxu1 }
  0xda   :  { %v386_v15 = vpop.f32.mrb[1].mxu1  ;;  %118 = vrot.lane.b32.xlu0 %v113_v13, %s1383_s12  ;;  %v115_v16 = vpop.f32.mrb[1].mxu0 }
  0xdb   :  { %391 = vrot.lane.b32.xlu1 %v386_v15, %s1384_s13 }
  0xdd   :  { %v206_v17 = vpop.f32.mrb[2].mxu0 }
  0xde   :  { %389 = vrot.lane.b32.xlu0 %v384_v14, %s1384_s13  ;;  %v208_v18 = vpop.f32.mrb[3].mxu0  ;;  %v549_v19 = vpop.f32.mrb[2].mxu1 }
  0xdf   :  { %211 = vrot.lane.b32.xlu1 %v206_v17, %s1385_s1  ;;  %v551_v20 = vpop.f32.mrb[3].mxu1 }
  0xe1   :  { %v293_v21 = vpop.f32.mrb[4].mxu0 }
  0xe2   :  { %120 = vrot.lane.b32.xlu0 %v115_v16, %s1383_s12  ;;  %v295_v22 = vpop.f32.mrb[5].mxu0  ;;  %v727_v23 = vpop.f32.mrb[4].mxu1 }
  0xe3   :  { %213 = vrot.lane.b32.xlu1 %v208_v18, %s1385_s1  ;;  %v729_v24 = vpop.f32.mrb[5].mxu1 }
  0xe5   :  { %v1508_v25 = vpop.f32.mrb[6].mxu0 }
  0xe6   :  { %554 = vrot.lane.b32.xlu0 %v549_v19, %s1386_s14  ;;  %v1511_v26 = vpop.f32.mrb[7].mxu0 }
  0xe7   :  { %556 = vrot.lane.b32.xlu1 %v551_v20, %s1386_s14 }
  0xe9   :  { %v636_v27 = vpop.f32.mrb[8].mxu0 }
  0xea   :  { %298 = vrot.lane.b32.xlu0 %v293_v21, %s1387_s15  ;;  %v638_v28 = vpop.f32.mrb[9].mxu0 }
  0xeb   :  { %732 = vrot.lane.b32.xlu1 %v727_v23, %s1388_s16 }
  0xed   :  { %v814_v30 = vpop.f32.mrb[10].mxu0 }
  0xee   :  { %835 = vperm.xlu0 %1343, %v832_v29   ;;  %v816_v31 = vpop.f32.mrb[11].mxu0 }
  0xef   :  { %300 = vrot.lane.b32.xlu1 %v295_v22, %s1387_s15 }
  0xf2   :  { %641 = vrot.lane.b32.xlu0 %v636_v27, %s1389_s19 }
  0xf3   :  { %734 = vrot.lane.b32.xlu1 %v729_v24, %s1388_s16 }
  0xf6   :  { %819 = vrot.lane.b32.xlu0 %v814_v30, %s1390_s20 }
  0xf7   :  { %643 = vrot.lane.b32.xlu1 %v638_v28, %s1389_s19  ;;  %s1403_s19 = smov 52  }
  0xfb   :  { %821 = vrot.lane.b32.xlu1 %v816_v31, %s1390_s20  ;;  %s1404_s20 = smov 28  }
 0x14c   :  { %v119_v32 = vpop.permute.xlu0 %118 }
 0x14d   :  { %v392_v33 = vpop.permute.xlu1 %391 }
 0x150   :  { %v390_v35 = vpop.permute.xlu0 %389 }
 0x151   :  { %v212_v36 = vpop.permute.xlu1 %211  ;;  %v394_v4 = vsel %vm393_vm12, %v390_v35, %v392_v33  ;;  %v395_v5 = vsel %vm393_vm12, %v392_v33, %v390_v35 }
 0x152   :  { %v396_v8 = vsel %vm1529_vm5, %v395_v5, 0.0  ;;  %v397_v9 = vsel %vm1548_vm9, %v394_v4, 0.0  ;;  %v1147_v5 = vld [vmem:[%s1718_s3 + $0x30] sm:$0xff] }
 0x154   :  { %v121_v38 = vpop.permute.xlu0 %120 }
 0x155   :  { %v214_v39 = vpop.permute.xlu1 %213  ;;  %v123_v48 = vsel %vm122_vm2, %v119_v32, %v121_v38  ;;  %v124_v49 = vsel %vm122_vm2, %v121_v38, %v119_v32  ;;  %vm823_vm2 = vcmp.lt.s32.totalorder %v1519_v37, 111 }
 0x156   :  { %v217_v50 = vsel %vm215_vm4, %v214_v39, %v212_v36  ;;  %v131_v54 = vsel %vm1537_vm6, %v124_v49, 0.0  ;;  %v132_v55 = vsel %vm1548_vm9, %v123_v48, 0.0  ;;  %v216_v56 = vsel %vm215_vm4, %v212_v36, %v214_v39 }
 0x157   :  { %v218_v57 = vsel %vm125_vm3, %v217_v50, 0.0  ;;  %v221_v3 = vadd.f32 %v216_v56, %v132_v55  ;;  %vm827_vm3 = vmand %vm649_vm15, %vm1568_vm11  ;;  %v28_v48 = vand.u32 1, %v1522_v40  ;;  %vm1401_vm9 = vmmov 0  }
 0x158   :  { %v555_v43 = vpop.permute.xlu0 %554  ;;  %v220_v1 = vadd.f32 %v218_v57, %v131_v54 }
 0x159   :  { %v557_v42 = vpop.permute.xlu1 %556  ;;  %vm30_vm6 = vcmp.eq.s32.totalorder %v28_v48, 0 }
 0x15a   :  { %v559_v15 = vsel %vm558_vm13, %v555_v43, %v557_v42  ;;  %v560_v16 = vsel %vm558_vm13, %v557_v42, %v555_v43 }
 0x15b   :  { %v561_v19 = vsel %vm1543_vm7, %v559_v15, 0.0  ;;  %v562_v20 = vsel %vm1568_vm11, %v560_v16, 0.0 }
 0x15c   :  { %v299_v58 = vpop.permute.xlu0 %298 }
 0x15d   :  { %v733_v46 = vpop.permute.xlu1 %732 }
 0x161   :  { %v301_v59 = vpop.permute.xlu1 %300 }
 0x162   :  { %v303_v61 = vsel %vm302_vm8, %v299_v58, %v301_v59  ;;  %v304_v62 = vsel %vm302_vm8, %v301_v59, %v299_v58 }
 0x163   :  { %v309_v63 = vsel %vm1556_vm10, %v304_v62, 0.0  ;;  %v310_v0 = vsel %vm1568_vm11, %v303_v61, 0.0  ;;  %vm1067_vm10 = vcmask 286976   ;;  %vm1073_vm11 = vcmask 58401  }
 0x164   :  { %v311_v6 = vadd.f32 %v309_v63, %v220_v1  ;;  %v312_v7 = vadd.f32 %v310_v0, %v221_v3  ;;  %v31_v63 = vand.u32 16, %v1519_v37  ;;  %v32_v0 = vand.u32 16, %v1522_v40 }
 0x165   :  { %v735_v10 = vpop.permute.xlu1 %734 }
 0x166   :  { %v398_v11 = vadd.f32 %v396_v8, %v311_v6  ;;  %v399_v12 = vadd.f32 %v397_v9, %v312_v7  ;;  %v738_v21 = vsel %vm736_vm14, %v735_v10, %v733_v46  ;;  %v737_v32 = vsel %vm736_vm14, %v733_v46, %v735_v10 }
 0x167   :  { %v740_v33 = vsel %vm649_vm15, %v738_v21, 0.0  ;;  %v27_v46 = vand.u32 1, %v1519_v37  ;;  %vm1646_vm8 = vcmp.eq.s32.totalorder %v32_v0, 0  ;;  %vm1093_vm15 = vcmask 126051  }
 0x168   :  { %v476_v17 = vadd.f32 %v1508_v25, %v398_v11  ;;  %v477_v18 = vadd.f32 %v1511_v26, %v399_v12 }
 0x169   :  { %v644_v14 = vpop.permute.xlu1 %643 }
 0x16a   :  { %v563_v23 = vadd.f32 %v561_v19, %v476_v17  ;;  %v564_v24 = vadd.f32 %v562_v20, %v477_v18 }
 0x16d   :  { %v836_v13 = vpop.permute.xlu0 %835  ;;  %v822_v29 = vpop.permute.xlu1 %821 }
 0x171   :  { %v642_v22 = vpop.permute.xlu0 %641 }
 0x172   :  { %v646_v25 = vsel %vm645_vm0, %v642_v22, %v644_v14  ;;  %v647_v26 = vsel %vm645_vm0, %v644_v14, %v642_v22  ;;  %vm1098_vm0 = vcmask 388451  }
 0x173   :  { %v652_v27 = vsel %vm1529_vm5, %v646_v25, 0.0  ;;  %v653_v28 = vsel %vm651_vm1, %v647_v26, 0.0  ;;  %vm29_vm5 = vcmp.eq.s32.totalorder %v27_v46, 0  ;;  %vm1103_vm1 = vcmask 159876  }
 0x174   :  { %v654_v30 = vadd.f32 %v652_v27, %v563_v23  ;;  %v655_v31 = vadd.f32 %v653_v28, %v564_v24 }
 0x175   :  { %v820_v34 = vpop.permute.xlu0 %819 }
 0x176   :  { %v741_v35 = vadd.f32 %v737_v32, %v654_v30  ;;  %v742_v36 = vadd.f32 %v740_v33, %v655_v31  ;;  %v824_v38 = vsel %vm823_vm2, %v820_v34, %v822_v29  ;;  %v825_v39 = vsel %vm823_vm2, %v822_v29, %v820_v34 }
 0x177   :  { %v828_v41 = vsel %vm1543_vm7, %v824_v38, 0.0  ;;  %v829_v42 = vsel %vm827_vm3, %v825_v39, 0.0  ;;  %vm1642_vm7 = vcmp.eq.s32.totalorder %v31_v63, 0  ;;  %v1144_v63 = vld [vmem:[%s1718_s3 + $0x18] sm:$0xff]  ;;  %vm1108_vm2 = vcmask 422276  }
 0x178   :  { %v830_v43 = vadd.f32 %v828_v41, %v741_v35  ;;  %v831_v44 = vadd.f32 %v829_v42, %v742_v36  ;;  %vm1113_vm3 = vcmask 193701  }
 0x17a   :  { %v838_v45 = vadd.f32 %v836_v13, %v830_v43  ;;  %v839_v47 = vadd.f32 %v836_v13, %v831_v44 }
 0x17c   :  { %840 = vrot.lane.b32.xlu0 %v838_v45, %s1386_s14  ;;  %842 = vrot.lane.b32.xlu1 %v839_v47, %s1386_s14 }
 0x180   :  { %846 = vrot.lane.b32.xlu0 %v838_v45, %s1384_s13  ;;  %848 = vrot.lane.b32.xlu1 %v839_v47, %s1384_s13 }
 0x1ee   :  { %v841_v49 = vpop.permute.xlu0 %840  ;;  %v843_v50 = vpop.permute.xlu1 %842 }
 0x1ef   :  { %v844_v53 = vsel %vm558_vm13, %v841_v49, %v843_v50  ;;  %v845_v54 = vsel %vm558_vm13, %v843_v50, %v841_v49  ;;  %vm1083_vm13 = vcmask 92226  }
 0x1f2   :  { %v847_v51 = vpop.permute.xlu0 %846  ;;  %v849_v52 = vpop.permute.xlu1 %848 }
 0x1f3   :  { %v850_v55 = vsel %vm393_vm12, %v847_v51, %v849_v52  ;;  %v851_v56 = vsel %vm393_vm12, %v849_v52, %v847_v51  ;;  %vm1078_vm12 = vcmask 320801  }
 0x1f4   :  { %v852_v57 = vsel %vm29_vm5, %v844_v53, %v851_v56  ;;  %v853_v58 = vsel %vm30_vm6, %v845_v54, %v850_v55  ;;  %vm1118_vm5 = vcmask 456101   ;;  %vm1123_vm6 = vcmask 227526  }
 0x1f5   :  { %v872_v59 = vmin.f32 %v838_v45, %v852_v57  ;;  %v873_v60 = vmin.f32 %v839_v47, %v853_v58  ;;  %v854_v61 = vmax.f32 %v838_v45, %v852_v57  ;;  %v855_v62 = vmax.f32 %v839_v47, %v853_v58  ;;  %v1141_v58 = vld [vmem:[%s1718_s3] sm:$0xff] }
 0x1f7   :  { %874 = vrot.lane.b32.xlu0 %v872_v59, %s1388_s16  ;;  %876 = vrot.lane.b32.xlu1 %v873_v60, %s1388_s16 }
 0x1fb   :  { %880 = vrot.lane.b32.xlu0 %v872_v59, %s1385_s1  ;;  %882 = vrot.lane.b32.xlu1 %v873_v60, %s1385_s1 }
 0x1ff   :  { %856 = vrot.lane.b32.xlu0 %v854_v61, %s1388_s16  ;;  %858 = vrot.lane.b32.xlu1 %v855_v62, %s1388_s16 }
 0x203   :  { %862 = vrot.lane.b32.xlu0 %v854_v61, %s1385_s1  ;;  %864 = vrot.lane.b32.xlu1 %v855_v62, %s1385_s1 }
 0x269   :  { %v875_v1 = vpop.permute.xlu0 %874  ;;  %v877_v3 = vpop.permute.xlu1 %876 }
 0x26a   :  { %v878_v8 = vsel %vm736_vm14, %v875_v1, %v877_v3  ;;  %v879_v9 = vsel %vm736_vm14, %v877_v3, %v875_v1  ;;  %v1145_v1 = vld [vmem:[%s1718_s3 + $0x20] sm:$0xff]  ;;  %v1146_v3 = vld [vmem:[%s1718_s3 + $0x28] sm:$0xff] }
 0x26b   :  { %v1311_v4 = vpack.c.bf16 %v1146_v3, %v1145_v1 }
 0x26d   :  { %v881_v6 = vpop.permute.xlu0 %880  ;;  %v883_v7 = vpop.permute.xlu1 %882 }
 0x26e   :  { %v884_v40 = vsel %vm215_vm4, %v881_v6, %v883_v7  ;;  %v885_v10 = vsel %vm215_vm4, %v883_v7, %v881_v6  ;;  %v1148_v6 = vld [vmem:[%s1718_s3 + $0x38] sm:$0xff] }
 0x26f   :  { %v886_v11 = vsel %vm1642_vm7, %v878_v8, %v885_v10  ;;  %v887_v12 = vsel %vm1646_vm8, %v879_v9, %v884_v40  ;;  %v1314_v7 = vpack.c.bf16 %v1148_v6, %v1147_v5 }
 0x270   :  { %v888_v13 = vmin.f32 %v872_v59, %v886_v11  ;;  %v889_v14 = vmin.f32 %v873_v60, %v887_v12  ;;  %v1142_v59 = vld [vmem:[%s1718_s3 + $0x8] sm:$0xff] }
 0x271   :  { %v857_v15 = vpop.permute.xlu0 %856  ;;  %v859_v16 = vpop.permute.xlu1 %858  ;;  %v1305_v60 = vpack.c.bf16 %v1142_v59, %v1141_v58 }
 0x272   :  { %v903_v17 = vmax.f32 %v888_v13, %v889_v14  ;;  %v860_v20 = vsel %vm736_vm14, %v857_v15, %v859_v16  ;;  %v861_v21 = vsel %vm736_vm14, %v859_v16, %v857_v15  ;;  %vm1088_vm14 = vcmask 354626  }
 0x274   :  { %904 = vmax.xlane.f32.xlu0 %v903_v17 }
 0x275   :  { %v863_v18 = vpop.permute.xlu0 %862  ;;  %v865_v19 = vpop.permute.xlu1 %864 }
 0x276   :  { %v866_v22 = vsel %vm215_vm4, %v863_v18, %v865_v19  ;;  %v867_v23 = vsel %vm215_vm4, %v865_v19, %v863_v18  ;;  %vm1061_vm4 = vcmask 24576  }
 0x277   :  { %v868_v24 = vsel %vm1642_vm7, %v860_v20, %v867_v23  ;;  %v869_v25 = vsel %vm1646_vm8, %v861_v21, %v866_v22  ;;  %vm1128_vm7 = vcmask 489926   ;;  %vm1133_vm8 = vcmask 261351   ;;  %v1149_v22 = vld [vmem:[%s1719_s4] sm:$0x1] }
 0x278   :  { %v870_v26 = vmax.f32 %v854_v61, %v868_v24  ;;  %v871_v27 = vmax.f32 %v855_v62, %v869_v25  ;;  %v1395_v61 = vmov 0.0|0.0   ;;  %v1143_v62 = vld [vmem:[%s1718_s3 + $0x10] sm:$0xff]  ;;  %s1406_s3 = smov 60  }
 0x279   :  { %1304 = vmatprep.subr.bf16.mxu1 %v1395_v61  ;;  %v1308_v0 = vpack.c.bf16 %v1144_v63, %v1143_v62 }
 0x27a   :  { %v890_v28 = vmax.f32 %v870_v26, %v871_v27 }
 0x27c   :  { %891 = vmax.xlane.f32.xlu1 %v890_v28 }
 0x301   :  { %v905_v29 = vpop.xlane.xlu0 %904 }
 0x302   :  { %v906_v30 = vsub.f32 %v888_v13, %v905_v29  ;;  %v907_v31 = vsub.f32 %v889_v14, %v905_v29 }
 0x304   :  { %v908_v32 = vmul.f32 1.442695, %v906_v30  ;;  %v910_v33 = vmul.f32 1.442695, %v907_v31 }
 0x306   :  { %1345 = vpow2.f32 %v908_v32 }
 0x307   :  { %1347 = vpow2.f32 %v910_v33 }
 0x309   :  { %v892_v34 = vpop.xlane.xlu1 %891 }
 0x30a   :  { %v893_v37 = vsub.f32 %v870_v26, %v892_v34  ;;  %v894_v35 = vsub.f32 %v871_v27, %v892_v34 }
 0x30c   :  { %v895_v36 = vmul.f32 1.442695, %v893_v37  ;;  %v897_v38 = vmul.f32 1.442695, %v894_v35 }
 0x30e   :  { %1349 = vpow2.f32 %v895_v36 }
 0x30f   :  { %1351 = vpow2.f32 %v897_v38 }
 0x310   :  { %v1346_v39 = vpop.eup %1345 }
 0x311   :  { %v1348_v41 = vpop.eup %1347 }
 0x312   :  { %1053 = vmatprep.mubr.f32.mxu0 %v1348_v41  ;;  %v912_v42 = vadd.f32 %v1348_v41, %v1346_v39 }
 0x313   :  { %1054 = vmatmul.mubr.f32.vlgmr.msra.gmra.mrb[12].mxu0 %v1346_v39 }
 0x314   :  { %913 = vadd.xlane.f32.xlu0 %v912_v42 }
 0x318   :  { %v1350_v43 = vpop.eup %1349 }
 0x319   :  { %v1352_v44 = vpop.eup %1351 }
 0x31a   :  { %981 = vmatprep.mubr.f32.mxu1 %v1352_v44  ;;  %v899_v45 = vadd.f32 %v1352_v44, %v1350_v43 }
 0x31b   :  { %982 = vmatmul.mubr.f32.vlgmr.msra.gmra.mrb[6].mxu1 %v1350_v43 }
 0x31c   :  { %900 = vadd.xlane.f32.xlu0 %v899_v45  ;;  %1306 = vmatpush3.bf16.msra.mxu1 %v1305_v60 }
 0x31d   :  { %1307 = vmatprep.subr.bf16.mxu1 %v1395_v61  ;;  %1301 = vmatprep.mubr.msk.f32.mxu1 %vm1401_vm9, %v1381_v2  ;;  %vm1150_vm9 = vcmask 523264  }
 0x320   :  { %1309 = vmatpush3.bf16.msra.mxu1 %v1308_v0 }
 0x321   :  { %1310 = vmatprep.subr.bf16.mxu1 %v1395_v61 }
 0x324   :  { %1312 = vmatpush3.bf16.msra.mxu1 %v1311_v4 }
 0x325   :  { %1313 = vmatprep.subr.bf16.mxu1 %v1395_v61 }
 0x328   :  { %1315 = vmatpush3.bf16.msra.mxu1 %v1314_v7 }
 0x3a1   :  { %v914_v47 = vpop.xlane.xlu0 %913 }
 0x3a2   :  { %1353 = vrcp.f32 %v914_v47 }
 0x3a9   :  { %v901_v46 = vpop.xlane.xlu0 %900 }
 0x3aa   :  { %1355 = vrcp.f32 %v901_v46 }
 0x3ac   :  { %v1354_v48 = vpop.eup %1353 }
 0x3b4   :  { %v1356_v53 = vpop.eup %1355 }
 0x3e6   :  { %v1055_v49 = vpop.f32.mrb[12].mxu0 }
 0x3e7   :  { %v1059_v50 = vmul.f32 %v1354_v48, %v1055_v49  ;;  %v1057_v51 = vpop.f32.mrb[13].mxu0 }
 0x3e9   :  { %v1060_v52 = vmax.f32 %v1059_v50, 0.0 }
 0x3eb   :  { %1064 = vrot.lane.b32.xlu1 %v1060_v52, %s1391_s2  ;;  %s1405_s2 = smov 56  }
 0x3ee   :  { %v983_v54 = vpop.f32.mrb[6].mxu1 }
 0x3ef   :  { %v987_v55 = vmul.f32 %v1356_v53, %v983_v54  ;;  %1075 = vrot.lane.b32.xlu1 %v1060_v52, %s1392_s21  ;;  %v985_v56 = vpop.f32.mrb[7].mxu1 }
 0x3f1   :  { %v988_v57 = vmax.f32 %v987_v55, 0.0 }
 0x3f3   :  { %1080 = vrot.lane.b32.xlu1 %v988_v57, %s1393_s22  ;;  %1070 = vrot.lane.b32.xlu0 %v988_v57, %s1394_s23  ;;  %1062 = vst.msk [vmem:[#allocation2] sm:$0x1] %vm1061_vm4, %v988_v57  ;;  %vm1138_vm4 = vcmask 523751   ;;  %s1407_s23 = smov [#allocation3]  }
 0x3f4   :  { %s1232_s0 = sshll.u32 %s1407_s23, 4  ;;  %s1233_s0 = int_to_ptr.vmem [resolvable:$true] %s1232_s0 }
 0x3f5   :  { %s1357_s24 = scalar_lea.vmem %s1233_s0, 16  ;;  %s1361_s25 = scalar_lea.vmem %s1233_s0, 32 }
 0x3f6   :  { %p1358_p0 = scmp.ne.s32.totalorder %s1233_s0, %s1357_s24  ;;  %p1362_p1 = scmp.lt.s32.totalorder %s1233_s0, %s1233_s0 }
 0x3f7   :  { %1090 = vrot.lane.b32.xlu1 %v988_v57, %s1396_s27  ;;  %1085 = vrot.lane.b32.xlu0 %v1060_v52, %s1397_s28  ;;  %p1363_p2 = scmp.lt.s32.totalorder %s1361_s25, %s1357_s24 }
 0x3f9   :  { %p1364_p3 = por %p1363_p2, %p1362_p1 }
 0x3fb   :  { %1100 = vrot.lane.b32.xlu1 %v988_v57, %s1385_s1  ;;  %1095 = vrot.lane.b32.xlu0 %v1060_v52, %s1398_s8  ;;  %s1399_s1 = smov 20   ;;  %p1365_p4 = pnand %p1364_p3, %p1358_p0 }
 0x3ff   :  { %1110 = vrot.lane.b32.xlu1 %v988_v57, %s1399_s1  ;;  %1105 = vrot.lane.b32.xlu0 %v1060_v52, %s1400_s17 }
 0x403   :  { %1120 = vrot.lane.b32.xlu1 %v988_v57, %s1402_s18  ;;  %1115 = vrot.lane.b32.xlu0 %v1060_v52, %s1403_s19 }
 0x407   :  { %1130 = vrot.lane.b32.xlu1 %v988_v57, %s1404_s20  ;;  %1125 = vrot.lane.b32.xlu0 %v1060_v52, %s1405_s2 }
 0x40b   :  { %1135 = vrot.lane.b32.xlu0 %v1060_v52, %s1406_s3 }
 0x45d   :  { %v1065_v8 = vpop.permute.xlu1 %1064 }
 0x45e   :  { %1068 = vst.msk [vmem:[#allocation2] sm:$0x1] %vm1067_vm10, %v1065_v8  ;;  %vm1224_vm10 = vcmask 73728  }
 0x461   :  { %v1076_v9 = vpop.permute.xlu1 %1075 }
 0x465   :  { %v1071_v40 = vpop.permute.xlu0 %1070  ;;  %v1081_v2 = vpop.permute.xlu1 %1080 }
 0x466   :  { %1074 = vst.msk [vmem:[#allocation2 - $0x1] sm:$0x2] %vm1073_vm11, %v1071_v40 }
 0x467   :  { %1079 = vst.msk [vmem:[#allocation2 - $0x1] sm:$0x2] %vm1078_vm12, %v1076_v9 }
 0x468   :  { %1084 = vst.msk [vmem:[#allocation2 - $0x2] sm:$0x4] %vm1083_vm13, %v1081_v2 }
 0x469   :  { %v1086_v10 = vpop.permute.xlu0 %1085  ;;  %v1091_v11 = vpop.permute.xlu1 %1090 }
 0x46a   :  { %1089 = vst.msk [vmem:[#allocation2 - $0x2] sm:$0x4] %vm1088_vm14, %v1086_v10 }
 0x46b   :  { %1094 = vst.msk [vmem:[#allocation2 - $0x3] sm:$0x8] %vm1093_vm15, %v1091_v11 }
 0x46d   :  { %v1096_v12 = vpop.permute.xlu0 %1095  ;;  %v1101_v13 = vpop.permute.xlu1 %1100 }
 0x46e   :  { %1099 = vst.msk [vmem:[#allocation2 - $0x3] sm:$0x8] %vm1098_vm0, %v1096_v12 }
 0x46f   :  { %1104 = vst.msk [vmem:[#allocation2 - $0x4] sm:$0x10] %vm1103_vm1, %v1101_v13 }
 0x471   :  { %v1106_v14 = vpop.permute.xlu0 %1105  ;;  %v1111_v15 = vpop.permute.xlu1 %1110 }
 0x472   :  { %1109 = vst.msk [vmem:[#allocation2 - $0x4] sm:$0x10] %vm1108_vm2, %v1106_v14 }
 0x473   :  { %1114 = vst.msk [vmem:[#allocation2 - $0x5] sm:$0x20] %vm1113_vm3, %v1111_v15 }
 0x475   :  { %v1116_v16 = vpop.permute.xlu0 %1115  ;;  %v1121_v17 = vpop.permute.xlu1 %1120 }
 0x476   :  { %1119 = vst.msk [vmem:[#allocation2 - $0x5] sm:$0x20] %vm1118_vm5, %v1116_v16 }
 0x477   :  { %1124 = vst.msk [vmem:[#allocation2 - $0x6] sm:$0x40] %vm1123_vm6, %v1121_v17 }
 0x479   :  { %v1126_v18 = vpop.permute.xlu0 %1125  ;;  %v1131_v19 = vpop.permute.xlu1 %1130 }
 0x47a   :  { %1129 = vst.msk [vmem:[#allocation2 - $0x6] sm:$0x40] %vm1128_vm7, %v1126_v18 }
 0x47b   :  { %1134 = vst.msk [vmem:[#allocation2 - $0x7] sm:$0x80] %vm1133_vm8, %v1131_v19 }
 0x47d   :  { %v1136_v20 = vpop.permute.xlu0 %1135 }
 0x47e   :  { %1139 = vst.msk [vmem:[#allocation2 - $0x7] sm:$0x80] %vm1138_vm4, %v1136_v20 }
 0x485   :  { %v1140_v21 = vld [vmem:[#allocation2] sm:$0x1] }
 0x486   :  { %1302 = vmatmul.mubr.msk.f32.vlgmr.msra.gmra.mrb[8].mxu1 %vm1150_vm9, %v1140_v21 }
 0x559   :  { %v1220_v23 = vpop.f32.mrb[8].mxu1 }
 0x55a   :  { %v1221_v24 = vadd.f32 %v1220_v23, %v1149_v22  ;;  %v1303_v25 = vpop.f32.mrb[9].mxu1 }
 0x55c   :  { %1225 = vst.msk [vmem:[#allocation3] sm:$0x1] %vm1224_vm10, %v1221_v24 }
 0x55d   :  { %1368 = shalt.err (!%p1365_p4)
}
 0x55e   :  { %s1369_s4 = scalar_lea.hbm %s1720_s5, 16 }
 0x55f   :  { %p1370_p5 = scmp.ne.s32.totalorder %s1720_s5, %s1369_s4  ;;  %p1373_p6 = scmp.lt.u32.totalorder %s1369_s4, %s1720_s5 }
 0x561   :  { %p1375_p7 = pnand %p1373_p6, %p1370_p5 }
 0x563   :  { %1378 = shalt.err (!%p1375_p7)
}
 0x564   :  { %1235 = dma.vmem_to_hbm [thread:$0]  %s1233_s0, 16, %s1720_s5, [#allocation4]  }
 0x565   :  { %1379 = dma.done.wait [#allocation4], 16  }
 0x566   :  { %1380 = vsyncadd [#allocation4], 4294967280 }
 0x567   :  { %1239 = vsyncpa [#allocation4], 1 }

</bundles_post_ra>
